<compile_context>
chip_gen: v7x
topology: tpu7x:2x2x1
jax: 0.10.0
libtpu: 0.0.40
codegen_flags: <defaults>
</compile_context>

<pallas_src>
import functools

import jax
import jax.numpy as jnp
from jax.experimental import pallas as pl
from jax.experimental.pallas import tpu as pltpu

LANES = 128  # vreg lane width; last dim of every in-kernel tensor


def actor_kernel(x_ref, p_ref, out_ref, *, hid1, hid2, n_act):
    """x_ref: [TB, 128] f32 (state pre-broadcast across lanes).
    p_ref: packed params [R, 128] f32. out_ref: [TB, 128] f32 (probs in lanes 0..n_act-1).

    Packed-parameter row layout (rows lane-padded with zeros unless noted):
      row  0                    : fc1   weight row  (valid lanes [:hid1])
      row  1                    : fc1   bias        (valid lanes [:hid1])
      rows [2, 2+hid1)          : fc1_1 weight rows (valid lanes [:hid2])
      row  2+hid1               : fc1_1 bias, plus 1.0 at lane hid2 ("ones lane")
      rows [3+hid1, 3+hid1+n)   : fc2 column n over lanes [:hid2], b3[n] at lane hid2
    """
    x = x_ref[...]                                        # [TB, 128]

    # fc1 + ReLU : one vmul + vadd + vmax (d_in == 1).  Pad lanes stay exactly 0.
    h1 = jnp.maximum(x * p_ref[0] + p_ref[1], 0.0)

    # fc1_1 + ReLU : unrolled VPU broadcast-MACs over hid1 lanes.
    b2 = p_ref[2 + hid1]                                  # has 1.0 at lane hid2
    acc = h1[:, 0:1] * p_ref[2] + b2
    for k in range(1, hid1):                              # static unroll, hid1 == 12
        acc = acc + h1[:, k:k + 1] * p_ref[2 + k]
    h2 = jnp.maximum(acc, 0.0)   # valid lanes [:hid2], lane hid2 == 1.0, rest 0

    # fc2 : n_act lane reductions; bias rides along on the ones lane.
    base = 3 + hid1
    logits = [jnp.sum(h2 * p_ref[base + n], axis=-1, keepdims=True)   # [TB, 1]
              for n in range(n_act)]

    # Exact, numerically stable softmax over the n_act columns (pure VPU/EUP work).
    m = functools.reduce(jnp.maximum, logits)
    es = [jnp.exp(l - m) for l in logits]
    inv = 1.0 / functools.reduce(jnp.add, es)             # exact: rows sum to 1
    probs = [e * inv for e in es]

    # Assemble a lane-dense output (single unmasked store); pad lanes are 0.
    lane = jax.lax.broadcasted_iota(jnp.int32, out_ref.shape, 1)
    out = jnp.zeros(out_ref.shape, jnp.float32)
    for n in reversed(range(n_act)):
        out = jnp.where(lane == n, probs[n], out)
    out_ref[...] = out.astype(out_ref.dtype)


def actor_forward(s, packed, *, hid1, hid2, n_act, block_b=512):
    B = s.shape[0]
    # Pre-broadcast the scalar state across lanes in the wrapper (d_in == 1):
    # layer 1 in the kernel becomes a single vmul+vadd with no XLU broadcast, and the
    # input DMA is one lane-dense block instead of a strided [B, 1] copy.
    x = jnp.broadcast_to(s.astype(jnp.float32), (B, LANES))

    if B <= block_b:
        tb = B
    else:
        assert B % block_b == 0, "pad the batch to a multiple of block_b"
        tb = block_b

    kernel = functools.partial(actor_kernel, hid1=hid1, hid2=hid2, n_act=n_act)
    out_padded = pl.pallas_call(
        kernel,
        out_shape=jax.ShapeDtypeStruct((B, LANES), jnp.float32),
        grid=(B // tb,),
        in_specs=[
            pl.BlockSpec((tb, LANES), lambda i: (i, 0)),
            # Parameter blob: full block, constant index_map -> fetched once and kept
            # VMEM-resident across all grid steps (no re-DMA per batch tile).
            pl.BlockSpec(packed.shape, lambda i: (0, 0)),
        ],
        out_specs=pl.BlockSpec((tb, LANES), lambda i: (i, 0)),
        compiler_params=pltpu.CompilerParams(
            dimension_semantics=("parallel",)),  # lets v7x's 2nd TC split big batches
    )(x, packed)
    # TODO(synk): downstream consumers could accept the padded [B,128] output directly
    # and skip this tiny slice-copy in the latency-bound small-batch path.
    return out_padded[:, :n_act]


def init_params(key, input_dim, output_dim):
    """nn.Linear-style U(-1/sqrt(fan_in), 1/sqrt(fan_in)) init.
    Weights are stored as (in, out) = W.T relative to PyTorch."""
    ks = jax.random.split(key, 6)

    def lin(kw, kb, fan_in, fan_out):
        bound = 1.0 / jnp.sqrt(fan_in)
        w = jax.random.uniform(kw, (fan_in, fan_out), jnp.float32, -bound, bound)
        b = jax.random.uniform(kb, (fan_out,), jnp.float32, -bound, bound)
        return w, b

    w1, b1 = lin(ks[0], ks[1], input_dim, 12)        # fc1
    w2, b2 = lin(ks[2], ks[3], 12, output_dim)       # fc1_1
    w3, b3 = lin(ks[4], ks[5], output_dim, 3)        # fc2
    return w1, b1, w2, b2, w3, b3


def pack_params(w1, b1, w2, b2, w3, b3):
    """Build one lane-aligned [R, 128] f32 blob (done once, outside the kernel)."""
    assert w1.shape[0] == 1, "kernel pre-broadcasts the scalar state; needs input_dim == 1"
    hid1 = w1.shape[1]          # 12
    hid2 = w2.shape[1]          # 16
    n_act = w3.shape[1]         # 3

    def pad_row(v):
        r = jnp.zeros((LANES,), jnp.float32)
        return r.at[: v.shape[0]].set(v.astype(jnp.float32))

    rows = [pad_row(w1[0]), pad_row(b1)]                       # fc1 weight + bias
    rows += [pad_row(w2[k]) for k in range(hid1)]              # fc1_1 weight rows
    rows.append(pad_row(b2).at[hid2].set(1.0))                 # fc1_1 bias + ones lane
    for n in range(n_act):                                     # fc2 columns, bias folded in
        rows.append(pad_row(w3[:, n]).at[hid2].set(b3[n]))
    blob = jnp.stack(rows, axis=0)

    pad_rows = (-blob.shape[0]) % 8                            # sublane-align the blob
    if pad_rows:
        blob = jnp.concatenate([blob, jnp.zeros((pad_rows, LANES), jnp.float32)], 0)
    return blob


if __name__ == "__main__":
    input_dim = 1      # matches module-level `input_dim = 1`
    output_dim = 16
    n_act = 3
    batch = 8

    key = jax.random.PRNGKey(0)
    k_s, k_p = jax.random.split(key)
    s = jax.random.normal(k_s, (batch, input_dim), jnp.float32)

    w1, b1, w2, b2, w3, b3 = init_params(k_p, input_dim, output_dim)
    packed = pack_params(w1, b1, w2, b2, w3, b3)

    out = actor_forward(s, packed, hid1=12, hid2=output_dim, n_act=n_act)
    out = jax.block_until_ready(out)

    # pure-JAX reference
    h1 = jnp.maximum(s @ w1 + b1[None, :], 0.0)
    h2 = jnp.maximum(h1 @ w2 + b2[None, :], 0.0)
    ref = jax.nn.softmax(h2 @ w3 + b3[None, :], axis=-1)

    assert out.shape == (batch, n_act)
    assert jnp.allclose(out, ref, atol=1e-4, rtol=1e-4)
    assert jnp.allclose(jnp.sum(out, axis=-1), 1.0, atol=1e-4)

    print("KERNEL_OK")
</pallas_src>

<mosaic_0001>
module attributes {stable_mosaic.version = 11 : i64} {
  func.func @actor_kernel(%arg0: i32, %arg1: memref<8x128xf32, #tpu.memory_space<vmem>>, %arg2: memref<24x128xf32, #tpu.memory_space<vmem>>, %arg3: memref<8x128xf32, #tpu.memory_space<vmem>>) attributes {dimension_semantics = [#tpu.dimension_semantics<parallel>], iteration_bounds = array<i64: 1>, scalar_prefetch = 0 : i64, scratch_operands = 0 : i64, tpu.core_type = #tpu.core_type<tc>, window_params = [{transform_indices = @transform_0, window_bounds = array<i64: 8, 128>}, {pipeline_mode = #tpu.pipeline_mode<synchronous>, transform_indices = @transform_1, window_bounds = array<i64: 24, 128>}, {transform_indices = @transform_2, window_bounds = array<i64: 8, 128>}]} {
    %c0 = arith.constant 0 : index
    %c0_0 = arith.constant 0 : index
    %0 = vector.load %arg1[%c0, %c0_0] : memref<8x128xf32, #tpu.memory_space<vmem>>, vector<8x128xf32>
    %c0_1 = arith.constant 0 : index
    %c0_2 = arith.constant 0 : index
    %1 = vector.load %arg2[%c0_1, %c0_2] : memref<24x128xf32, #tpu.memory_space<vmem>>, vector<1x128xf32>
    %2 = vector.shape_cast %1 : vector<1x128xf32> to vector<128xf32>
    %3 = vector.shape_cast %2 : vector<128xf32> to vector<1x128xf32>
    %4 = vector.broadcast %3 : vector<1x128xf32> to vector<8x128xf32>
    %5 = arith.mulf %0, %4 : vector<8x128xf32>
    %c1 = arith.constant 1 : index
    %c0_3 = arith.constant 0 : index
    %6 = vector.load %arg2[%c1, %c0_3] : memref<24x128xf32, #tpu.memory_space<vmem>>, vector<1x128xf32>
    %7 = vector.shape_cast %6 : vector<1x128xf32> to vector<128xf32>
    %8 = vector.shape_cast %7 : vector<128xf32> to vector<1x128xf32>
    %9 = vector.broadcast %8 : vector<1x128xf32> to vector<8x128xf32>
    %10 = arith.addf %5, %9 : vector<8x128xf32>
    %cst = arith.constant 0.000000e+00 : f32
    %11 = vector.broadcast %cst : f32 to vector<8x128xf32>
    %12 = arith.maximumf %10, %11 : vector<8x128xf32>
    %c14 = arith.constant 14 : index
    %c0_4 = arith.constant 0 : index
    %13 = vector.load %arg2[%c14, %c0_4] : memref<24x128xf32, #tpu.memory_space<vmem>>, vector<1x128xf32>
    %14 = vector.shape_cast %13 : vector<1x128xf32> to vector<128xf32>
    %15 = vector.extract_strided_slice %12 {offsets = [0, 0], sizes = [8, 1], strides = [1, 1]} : vector<8x128xf32> to vector<8x1xf32>
    %c2 = arith.constant 2 : index
    %c0_5 = arith.constant 0 : index
    %16 = vector.load %arg2[%c2, %c0_5] : memref<24x128xf32, #tpu.memory_space<vmem>>, vector<1x128xf32>
    %17 = vector.shape_cast %16 : vector<1x128xf32> to vector<128xf32>
    %18 = vector.shape_cast %17 : vector<128xf32> to vector<1x128xf32>
    %19 = vector.broadcast %15 : vector<8x1xf32> to vector<8x128xf32>
    %20 = vector.broadcast %18 : vector<1x128xf32> to vector<8x128xf32>
    %21 = arith.mulf %19, %20 : vector<8x128xf32>
    %22 = vector.shape_cast %14 : vector<128xf32> to vector<1x128xf32>
    %23 = vector.broadcast %22 : vector<1x128xf32> to vector<8x128xf32>
    %24 = arith.addf %21, %23 : vector<8x128xf32>
    %25 = vector.extract_strided_slice %12 {offsets = [0, 1], sizes = [8, 1], strides = [1, 1]} : vector<8x128xf32> to vector<8x1xf32>
    %c3 = arith.constant 3 : index
    %c0_6 = arith.constant 0 : index
    %26 = vector.load %arg2[%c3, %c0_6] : memref<24x128xf32, #tpu.memory_space<vmem>>, vector<1x128xf32>
    %27 = vector.shape_cast %26 : vector<1x128xf32> to vector<128xf32>
    %28 = vector.shape_cast %27 : vector<128xf32> to vector<1x128xf32>
    %29 = vector.broadcast %25 : vector<8x1xf32> to vector<8x128xf32>
    %30 = vector.broadcast %28 : vector<1x128xf32> to vector<8x128xf32>
    %31 = arith.mulf %29, %30 : vector<8x128xf32>
    %32 = arith.addf %24, %31 : vector<8x128xf32>
    %33 = vector.extract_strided_slice %12 {offsets = [0, 2], sizes = [8, 1], strides = [1, 1]} : vector<8x128xf32> to vector<8x1xf32>
    %c4 = arith.constant 4 : index
    %c0_7 = arith.constant 0 : index
    %34 = vector.load %arg2[%c4, %c0_7] : memref<24x128xf32, #tpu.memory_space<vmem>>, vector<1x128xf32>
    %35 = vector.shape_cast %34 : vector<1x128xf32> to vector<128xf32>
    %36 = vector.shape_cast %35 : vector<128xf32> to vector<1x128xf32>
    %37 = vector.broadcast %33 : vector<8x1xf32> to vector<8x128xf32>
    %38 = vector.broadcast %36 : vector<1x128xf32> to vector<8x128xf32>
    %39 = arith.mulf %37, %38 : vector<8x128xf32>
    %40 = arith.addf %32, %39 : vector<8x128xf32>
    %41 = vector.extract_strided_slice %12 {offsets = [0, 3], sizes = [8, 1], strides = [1, 1]} : vector<8x128xf32> to vector<8x1xf32>
    %c5 = arith.constant 5 : index
    %c0_8 = arith.constant 0 : index
    %42 = vector.load %arg2[%c5, %c0_8] : memref<24x128xf32, #tpu.memory_space<vmem>>, vector<1x128xf32>
    %43 = vector.shape_cast %42 : vector<1x128xf32> to vector<128xf32>
    %44 = vector.shape_cast %43 : vector<128xf32> to vector<1x128xf32>
    %45 = vector.broadcast %41 : vector<8x1xf32> to vector<8x128xf32>
    %46 = vector.broadcast %44 : vector<1x128xf32> to vector<8x128xf32>
    %47 = arith.mulf %45, %46 : vector<8x128xf32>
    %48 = arith.addf %40, %47 : vector<8x128xf32>
    %49 = vector.extract_strided_slice %12 {offsets = [0, 4], sizes = [8, 1], strides = [1, 1]} : vector<8x128xf32> to vector<8x1xf32>
    %c6 = arith.constant 6 : index
    %c0_9 = arith.constant 0 : index
    %50 = vector.load %arg2[%c6, %c0_9] : memref<24x128xf32, #tpu.memory_space<vmem>>, vector<1x128xf32>
    %51 = vector.shape_cast %50 : vector<1x128xf32> to vector<128xf32>
    %52 = vector.shape_cast %51 : vector<128xf32> to vector<1x128xf32>
    %53 = vector.broadcast %49 : vector<8x1xf32> to vector<8x128xf32>
    %54 = vector.broadcast %52 : vector<1x128xf32> to vector<8x128xf32>
    %55 = arith.mulf %53, %54 : vector<8x128xf32>
    %56 = arith.addf %48, %55 : vector<8x128xf32>
    %57 = vector.extract_strided_slice %12 {offsets = [0, 5], sizes = [8, 1], strides = [1, 1]} : vector<8x128xf32> to vector<8x1xf32>
    %c7 = arith.constant 7 : index
    %c0_10 = arith.constant 0 : index
    %58 = vector.load %arg2[%c7, %c0_10] : memref<24x128xf32, #tpu.memory_space<vmem>>, vector<1x128xf32>
    %59 = vector.shape_cast %58 : vector<1x128xf32> to vector<128xf32>
    %60 = vector.shape_cast %59 : vector<128xf32> to vector<1x128xf32>
    %61 = vector.broadcast %57 : vector<8x1xf32> to vector<8x128xf32>
    %62 = vector.broadcast %60 : vector<1x128xf32> to vector<8x128xf32>
    %63 = arith.mulf %61, %62 : vector<8x128xf32>
    %64 = arith.addf %56, %63 : vector<8x128xf32>
    %65 = vector.extract_strided_slice %12 {offsets = [0, 6], sizes = [8, 1], strides = [1, 1]} : vector<8x128xf32> to vector<8x1xf32>
    %c8 = arith.constant 8 : index
    %c0_11 = arith.constant 0 : index
    %66 = vector.load %arg2[%c8, %c0_11] : memref<24x128xf32, #tpu.memory_space<vmem>>, vector<1x128xf32>
    %67 = vector.shape_cast %66 : vector<1x128xf32> to vector<128xf32>
    %68 = vector.shape_cast %67 : vector<128xf32> to vector<1x128xf32>
    %69 = vector.broadcast %65 : vector<8x1xf32> to vector<8x128xf32>
    %70 = vector.broadcast %68 : vector<1x128xf32> to vector<8x128xf32>
    %71 = arith.mulf %69, %70 : vector<8x128xf32>
    %72 = arith.addf %64, %71 : vector<8x128xf32>
    %73 = vector.extract_strided_slice %12 {offsets = [0, 7], sizes = [8, 1], strides = [1, 1]} : vector<8x128xf32> to vector<8x1xf32>
    %c9 = arith.constant 9 : index
    %c0_12 = arith.constant 0 : index
    %74 = vector.load %arg2[%c9, %c0_12] : memref<24x128xf32, #tpu.memory_space<vmem>>, vector<1x128xf32>
    %75 = vector.shape_cast %74 : vector<1x128xf32> to vector<128xf32>
    %76 = vector.shape_cast %75 : vector<128xf32> to vector<1x128xf32>
    %77 = vector.broadcast %73 : vector<8x1xf32> to vector<8x128xf32>
    %78 = vector.broadcast %76 : vector<1x128xf32> to vector<8x128xf32>
    %79 = arith.mulf %77, %78 : vector<8x128xf32>
    %80 = arith.addf %72, %79 : vector<8x128xf32>
    %81 = vector.extract_strided_slice %12 {offsets = [0, 8], sizes = [8, 1], strides = [1, 1]} : vector<8x128xf32> to vector<8x1xf32>
    %c10 = arith.constant 10 : index
    %c0_13 = arith.constant 0 : index
    %82 = vector.load %arg2[%c10, %c0_13] : memref<24x128xf32, #tpu.memory_space<vmem>>, vector<1x128xf32>
    %83 = vector.shape_cast %82 : vector<1x128xf32> to vector<128xf32>
    %84 = vector.shape_cast %83 : vector<128xf32> to vector<1x128xf32>
    %85 = vector.broadcast %81 : vector<8x1xf32> to vector<8x128xf32>
    %86 = vector.broadcast %84 : vector<1x128xf32> to vector<8x128xf32>
    %87 = arith.mulf %85, %86 : vector<8x128xf32>
    %88 = arith.addf %80, %87 : vector<8x128xf32>
    %89 = vector.extract_strided_slice %12 {offsets = [0, 9], sizes = [8, 1], strides = [1, 1]} : vector<8x128xf32> to vector<8x1xf32>
    %c11 = arith.constant 11 : index
    %c0_14 = arith.constant 0 : index
    %90 = vector.load %arg2[%c11, %c0_14] : memref<24x128xf32, #tpu.memory_space<vmem>>, vector<1x128xf32>
    %91 = vector.shape_cast %90 : vector<1x128xf32> to vector<128xf32>
    %92 = vector.shape_cast %91 : vector<128xf32> to vector<1x128xf32>
    %93 = vector.broadcast %89 : vector<8x1xf32> to vector<8x128xf32>
    %94 = vector.broadcast %92 : vector<1x128xf32> to vector<8x128xf32>
    %95 = arith.mulf %93, %94 : vector<8x128xf32>
    %96 = arith.addf %88, %95 : vector<8x128xf32>
    %97 = vector.extract_strided_slice %12 {offsets = [0, 10], sizes = [8, 1], strides = [1, 1]} : vector<8x128xf32> to vector<8x1xf32>
    %c12 = arith.constant 12 : index
    %c0_15 = arith.constant 0 : index
    %98 = vector.load %arg2[%c12, %c0_15] : memref<24x128xf32, #tpu.memory_space<vmem>>, vector<1x128xf32>
    %99 = vector.shape_cast %98 : vector<1x128xf32> to vector<128xf32>
    %100 = vector.shape_cast %99 : vector<128xf32> to vector<1x128xf32>
    %101 = vector.broadcast %97 : vector<8x1xf32> to vector<8x128xf32>
    %102 = vector.broadcast %100 : vector<1x128xf32> to vector<8x128xf32>
    %103 = arith.mulf %101, %102 : vector<8x128xf32>
    %104 = arith.addf %96, %103 : vector<8x128xf32>
    %105 = vector.extract_strided_slice %12 {offsets = [0, 11], sizes = [8, 1], strides = [1, 1]} : vector<8x128xf32> to vector<8x1xf32>
    %c13 = arith.constant 13 : index
    %c0_16 = arith.constant 0 : index
    %106 = vector.load %arg2[%c13, %c0_16] : memref<24x128xf32, #tpu.memory_space<vmem>>, vector<1x128xf32>
    %107 = vector.shape_cast %106 : vector<1x128xf32> to vector<128xf32>
    %108 = vector.shape_cast %107 : vector<128xf32> to vector<1x128xf32>
    %109 = vector.broadcast %105 : vector<8x1xf32> to vector<8x128xf32>
    %110 = vector.broadcast %108 : vector<1x128xf32> to vector<8x128xf32>
    %111 = arith.mulf %109, %110 : vector<8x128xf32>
    %112 = arith.addf %104, %111 : vector<8x128xf32>
    %cst_17 = arith.constant 0.000000e+00 : f32
    %113 = vector.broadcast %cst_17 : f32 to vector<8x128xf32>
    %114 = arith.maximumf %112, %113 : vector<8x128xf32>
    %c15 = arith.constant 15 : index
    %c0_18 = arith.constant 0 : index
    %115 = vector.load %arg2[%c15, %c0_18] : memref<24x128xf32, #tpu.memory_space<vmem>>, vector<1x128xf32>
    %116 = vector.shape_cast %115 : vector<1x128xf32> to vector<128xf32>
    %117 = vector.shape_cast %116 : vector<128xf32> to vector<1x128xf32>
    %118 = vector.broadcast %117 : vector<1x128xf32> to vector<8x128xf32>
    %119 = arith.mulf %114, %118 : vector<8x128xf32>
    %cst_19 = arith.constant dense<0.000000e+00> : vector<8xf32>
    %120 = vector.multi_reduction <add>, %119, %cst_19 [1] : vector<8x128xf32> to vector<8xf32>
    %121 = vector.shape_cast %120 : vector<8xf32> to vector<8x1xf32>
    %c16 = arith.constant 16 : index
    %c0_20 = arith.constant 0 : index
    %122 = vector.load %arg2[%c16, %c0_20] : memref<24x128xf32, #tpu.memory_space<vmem>>, vector<1x128xf32>
    %123 = vector.shape_cast %122 : vector<1x128xf32> to vector<128xf32>
    %124 = vector.shape_cast %123 : vector<128xf32> to vector<1x128xf32>
    %125 = vector.broadcast %124 : vector<1x128xf32> to vector<8x128xf32>
    %126 = arith.mulf %114, %125 : vector<8x128xf32>
    %cst_21 = arith.constant dense<0.000000e+00> : vector<8xf32>
    %127 = vector.multi_reduction <add>, %126, %cst_21 [1] : vector<8x128xf32> to vector<8xf32>
    %128 = vector.shape_cast %127 : vector<8xf32> to vector<8x1xf32>
    %c17 = arith.constant 17 : index
    %c0_22 = arith.constant 0 : index
    %129 = vector.load %arg2[%c17, %c0_22] : memref<24x128xf32, #tpu.memory_space<vmem>>, vector<1x128xf32>
    %130 = vector.shape_cast %129 : vector<1x128xf32> to vector<128xf32>
    %131 = vector.shape_cast %130 : vector<128xf32> to vector<1x128xf32>
    %132 = vector.broadcast %131 : vector<1x128xf32> to vector<8x128xf32>
    %133 = arith.mulf %114, %132 : vector<8x128xf32>
    %cst_23 = arith.constant dense<0.000000e+00> : vector<8xf32>
    %134 = vector.multi_reduction <add>, %133, %cst_23 [1] : vector<8x128xf32> to vector<8xf32>
    %135 = vector.shape_cast %134 : vector<8xf32> to vector<8x1xf32>
    %136 = arith.maximumf %121, %128 : vector<8x1xf32>
    %137 = arith.maximumf %136, %135 : vector<8x1xf32>
    %138 = arith.subf %121, %137 : vector<8x1xf32>
    %139 = math.exp %138 : vector<8x1xf32>
    %140 = arith.subf %128, %137 : vector<8x1xf32>
    %141 = math.exp %140 : vector<8x1xf32>
    %142 = arith.subf %135, %137 : vector<8x1xf32>
    %143 = math.exp %142 : vector<8x1xf32>
    %144 = arith.addf %139, %141 : vector<8x1xf32>
    %145 = arith.addf %144, %143 : vector<8x1xf32>
    %cst_24 = arith.constant 1.000000e+00 : f32
    %146 = vector.broadcast %cst_24 : f32 to vector<8x1xf32>
    %147 = arith.divf %146, %145 : vector<8x1xf32>
    %148 = arith.mulf %139, %147 : vector<8x1xf32>
    %149 = arith.mulf %141, %147 : vector<8x1xf32>
    %150 = arith.mulf %143, %147 : vector<8x1xf32>
    %151 = tpu.iota {dimensions = array<i32: 1>} : vector<8x128xi32>
    %cst_25 = arith.constant 0.000000e+00 : f32
    %152 = vector.broadcast %cst_25 : f32 to vector<8x128xf32>
    %c2_i32 = arith.constant 2 : i32
    %153 = vector.broadcast %c2_i32 : i32 to vector<8x128xi32>
    %154 = arith.cmpi eq, %151, %153 : vector<8x128xi32>
    %155 = vector.shape_cast %150 : vector<8x1xf32> to vector<8x1xf32>
    %156 = vector.broadcast %155 : vector<8x1xf32> to vector<8x128xf32>
    %157 = arith.select %154, %156, %152 : vector<8x128xi1>, vector<8x128xf32>
    %c1_i32 = arith.constant 1 : i32
    %158 = vector.broadcast %c1_i32 : i32 to vector<8x128xi32>
    %159 = arith.cmpi eq, %151, %158 : vector<8x128xi32>
    %160 = vector.shape_cast %149 : vector<8x1xf32> to vector<8x1xf32>
    %161 = vector.broadcast %160 : vector<8x1xf32> to vector<8x128xf32>
    %162 = arith.select %159, %161, %157 : vector<8x128xi1>, vector<8x128xf32>
    %c0_i32 = arith.constant 0 : i32
    %163 = vector.broadcast %c0_i32 : i32 to vector<8x128xi32>
    %164 = arith.cmpi eq, %151, %163 : vector<8x128xi32>
    %165 = vector.shape_cast %148 : vector<8x1xf32> to vector<8x1xf32>
    %166 = vector.broadcast %165 : vector<8x1xf32> to vector<8x128xf32>
    %167 = arith.select %164, %166, %162 : vector<8x128xi1>, vector<8x128xf32>
    %c0_26 = arith.constant 0 : index
    %c0_27 = arith.constant 0 : index
    %168 = vector.load %arg3[%c0_26, %c0_27] : memref<8x128xf32, #tpu.memory_space<vmem>>, vector<8x128xf32>
    tpu.vector_store %arg3[%c0_26, %c0_27], %167 {strides = array<i32>} : memref<8x128xf32, #tpu.memory_space<vmem>>, vector<8x128xf32>,
    return
  }
  func.func @transform_0(%arg0: i32) -> (i32, i32) {
    %c0_i32 = arith.constant 0 : i32
    %c0_i32_0 = arith.constant 0 : i32
    return %arg0, %c0_i32 : i32, i32
  }
  func.func @transform_1(%arg0: i32) -> (i32, i32) {
    %c0_i32 = arith.constant 0 : i32
    %c0_i32_0 = arith.constant 0 : i32
    %c0_i32_1 = arith.constant 0 : i32
    return %c0_i32, %c0_i32_0 : i32, i32
  }
  func.func @transform_2(%arg0: i32) -> (i32, i32) {
    %c0_i32 = arith.constant 0 : i32
    %c0_i32_0 = arith.constant 0 : i32
    return %arg0, %c0_i32 : i32, i32
  }
}

</mosaic_0001>

<bundles_post_ra>
// kernel: tpu_custom_call.1
= control target key start
LH: loop header
LB: loop body
LE: loop exit
PB: predicated region body
PF: predicated region fallthrough
CT: control target
= control target key end

     0   :  { %7 = vsyncpa [#allocation3], 0  ;;  %s460_s0 = inlined_call_operand.hbm [shape: f32[8,128], index: 0, kind: input, shape index: {}]   ;;  %s461_s1 = inlined_call_operand.hbm [shape: f32[24,128], index: 1, kind: input, shape index: {}]   ;;  %s462_s2 = inlined_call_operand.hbm [shape: f32[8,128], index: 2, kind: output, shape index: {}]  }
   0x1   :  { %8 = vsyncpa [#allocation6], 0 }
   0x2   :  { %9 = vsyncpa [#allocation4], 0  ;;  %s385_s9 = smov [#allocation2]   ;;  %s386_s11 = smov [#allocation5]  }
   0x3   :  { %s16_s10 = sshll.u32 %s385_s9, 4  ;;  %s25_s12 = sshll.u32 %s386_s11, 4  ;;  %s17_s10 = int_to_ptr.vmem [resolvable:$true] %s16_s10  ;;  %s417_s12 = int_to_ptr.vmem [resolvable:$true] %s25_s12 }
   0x4   :  { %s313_s15 = scalar_lea.hbm %s460_s0, 128 }
   0x5   :  { %p314_p0 = scmp.ne.s32.totalorder %s460_s0, %s313_s15  ;;  %p317_p1 = scmp.lt.u32.totalorder %s313_s15, %s460_s0 }
   0x7   :  { %p319_p2 = pnand %p317_p1, %p314_p0 }
   0x9   :  { %322 = shalt.err (!%p319_p2)
}
   0xa   :  { %s323_s20 = scalar_lea.vmem %s17_s10, 128  ;;  %p328_p4 = scmp.lt.s32.totalorder %s17_s10, %s17_s10 }
   0xb   :  { %p324_p3 = scmp.ne.s32.totalorder %s17_s10, %s323_s20  ;;  %p329_p5 = scmp.lt.s32.totalorder %s323_s20, %s323_s20 }
   0xd   :  { %p330_p6 = por %p329_p5, %p328_p4 }
   0xf   :  { %p331_p7 = pnand %p330_p6, %p324_p3 }
  0x11   :  { %334 = shalt.err (!%p331_p7)
}
  0x12   :  { %19 = dma.hbm_to_vmem [thread:$0]  %s460_s0, 128, %s17_s10, [#allocation3]  }
  0x13   :  { %s335_s25 = scalar_lea.hbm %s461_s1, 384 }
  0x14   :  { %p336_p8 = scmp.ne.s32.totalorder %s461_s1, %s335_s25  ;;  %p339_p9 = scmp.lt.u32.totalorder %s335_s25, %s461_s1 }
  0x16   :  { %p341_p10 = pnand %p339_p9, %p336_p8 }
  0x18   :  { %344 = shalt.err (!%p341_p10)
}
  0x19   :  { %s345_s30 = scalar_lea.vmem %s417_s12, 384  ;;  %p350_p12 = scmp.lt.s32.totalorder %s417_s12, %s417_s12 }
  0x1a   :  { %p346_p11 = scmp.ne.s32.totalorder %s417_s12, %s345_s30  ;;  %p351_p13 = scmp.lt.s32.totalorder %s345_s30, %s345_s30 }
  0x1c   :  { %p352_p0 = por %p351_p13, %p350_p12 }
  0x1e   :  { %p353_p1 = pnand %p352_p0, %p346_p11 }
  0x20   :  { %356 = shalt.err (!%p353_p1)
}
  0x21   :  { %s387_s0 = smov 128   ;;  %s388_s3 = smov 8  }
  0x22   :  { %31 = dma.hbm_to_vmem [thread:$0]  %s461_s1, 384, %s417_s12, [#allocation6], %s387_s0, %s387_s0, %s388_s3  }
  0x23   :  { %379 = dma.done.wait [#allocation3], 128  }
  0x24   :  { %380 = vsyncadd [#allocation3], 4294967168 }
  0x25   :  { %381 = dma.done.wait [#allocation6], 384  }
  0x26   :  { %382 = vsyncadd [#allocation6], 4294966912  ;;  %v389_v0 = vmov 2   ;;  %v390_v1 = vmov 0   ;;  %v38_v2 = vld [vmem:[#allocation2] sm:$0xff]  ;;  %v391_v8 = vmov 3  }
  0x27   :  { %295 = vset.pattern.permute.xlu1 %v389_v0  ;;  %293 = vset.pattern.permute.xlu0 %v390_v1  ;;  %v258_v3 = vld [vmem:[#allocation5] ss:$0 sm:$0xff]  ;;  %v259_v4 = vld [vmem:[#allocation5 + $0x1] ss:$0 sm:$0xff]  ;;  %v392_v9 = vmov 1   ;;  %v393_v10 = vmov 4  }
  0x28   :  { %v44_v5 = vmul.f32 %v258_v3, %v38_v2  ;;  %v394_v11 = vmov 5   ;;  %v395_v12 = vmov 6   ;;  %v396_v13 = vmov 8   ;;  %v260_v18 = vld [vmem:[#allocation5 + $0x2] ss:$0 sm:$0xff]  ;;  %s401_s1 = smov [#allocation7]  }
  0x29   :  { %v397_v14 = vmov 7   ;;  %v398_v15 = vmov 11   ;;  %v399_v16 = vmov 9   ;;  %v400_v17 = vmov 10   ;;  %v261_v21 = vld [vmem:[#allocation5 + $0xe] ss:$0 sm:$0xff] }
  0x2a   :  { %v50_v6 = vadd.f32 %v259_v4, %v44_v5  ;;  %v262_v23 = vld [vmem:[#allocation5 + $0x3] ss:$0 sm:$0xff]  ;;  %v263_v25 = vld [vmem:[#allocation5 + $0x4] ss:$0 sm:$0xff]  ;;  %v264_v29 = vld [vmem:[#allocation5 + $0x5] ss:$0 sm:$0xff] }
  0x2b   :  { %v265_v32 = vld [vmem:[#allocation5 + $0x6] ss:$0 sm:$0xff]  ;;  %v266_v36 = vld [vmem:[#allocation5 + $0x7] ss:$0 sm:$0xff]  ;;  %v267_v42 = vld [vmem:[#allocation5 + $0x8] ss:$0 sm:$0xff] }
  0x2c   :  { %v51_v7 = vmax.f32 %v50_v6, 0.0  ;;  %v268_v46 = vld [vmem:[#allocation5 + $0x9] ss:$0 sm:$0xff]  ;;  %v269_v48 = vld [vmem:[#allocation5 + $0xa] ss:$0 sm:$0xff]  ;;  %s248_s6 = sshll.u32 %s401_s1, 4  ;;  %s249_s6 = int_to_ptr.vmem [resolvable:$true] %s248_s6 }
  0x2d   :  { %v270_v54 = vld [vmem:[#allocation5 + $0xb] ss:$0 sm:$0xff]  ;;  %v271_v58 = vld [vmem:[#allocation5 + $0xc] ss:$0 sm:$0xff]  ;;  %v272_v59 = vld [vmem:[#allocation5 + $0xd] ss:$0 sm:$0xff]  ;;  %p362_p3 = scmp.lt.s32.totalorder %s249_s6, %s249_s6 }
  0x2e   :  { %82 = vperm.xlu1 %295, %v51_v7   ;;  %56 = vperm.xlu0 %293, %v51_v7   ;;  %v274_v3 = vld [vmem:[#allocation5 + $0x10] ss:$0 sm:$0xff]  ;;  %v273_v4 = vld [vmem:[#allocation5 + $0xf] ss:$0 sm:$0xff]  ;;  %s357_s7 = scalar_lea.vmem %s249_s6, 128 }
  0x2f   :  { %p358_p2 = scmp.ne.s32.totalorder %s249_s6, %s357_s7  ;;  %p363_p4 = scmp.lt.s32.totalorder %s357_s7, %s357_s7 }
  0x31   :  { %p364_p5 = por %p363_p4, %p362_p3 }
  0x32   :  { %296 = vset.pattern.permute.xlu1 %v391_v8  ;;  %294 = vset.pattern.permute.xlu0 %v392_v9  ;;  %v275_v8 = vld [vmem:[#allocation5 + $0x11] ss:$0 sm:$0xff] }
  0x33   :  { %93 = vperm.xlu1 %296, %v51_v7   ;;  %71 = vperm.xlu0 %294, %v51_v7   ;;  %p365_p6 = pnand %p364_p5, %p358_p2 }
  0x37   :  { %297 = vset.pattern.permute.xlu1 %v393_v10  ;;  %298 = vset.pattern.permute.xlu0 %v394_v11 }
  0x38   :  { %104 = vperm.xlu1 %297, %v51_v7   ;;  %115 = vperm.xlu0 %298, %v51_v7  }
  0x3c   :  { %299 = vset.pattern.permute.xlu1 %v395_v12  ;;  %301 = vset.pattern.permute.xlu0 %v396_v13 }
  0x3d   :  { %126 = vperm.xlu1 %299, %v51_v7   ;;  %148 = vperm.xlu0 %301, %v51_v7  }
  0x41   :  { %300 = vset.pattern.permute.xlu1 %v397_v14  ;;  %304 = vset.pattern.permute.xlu0 %v398_v15 }
  0x42   :  { %137 = vperm.xlu1 %300, %v51_v7   ;;  %181 = vperm.xlu0 %304, %v51_v7  }
  0x46   :  { %302 = vset.pattern.permute.xlu1 %v399_v16 }
  0x47   :  { %159 = vperm.xlu1 %302, %v51_v7  }
  0x4b   :  { %303 = vset.pattern.permute.xlu1 %v400_v17 }
  0x4c   :  { %170 = vperm.xlu1 %303, %v51_v7  }
  0xad   :  { %v83_v19 = vpop.permute.xlu1 %82  ;;  %v57_v20 = vpop.permute.xlu0 %56 }
  0xae   :  { %v63_v22 = vmul.f32 %v260_v18, %v57_v20  ;;  %v89_v30 = vmul.f32 %v263_v25, %v83_v19 }
  0xb0   :  { %v68_v24 = vadd.f32 %v261_v21, %v63_v22 }
  0xb2   :  { %v94_v26 = vpop.permute.xlu1 %93  ;;  %v72_v27 = vpop.permute.xlu0 %71 }
  0xb3   :  { %v78_v28 = vmul.f32 %v262_v23, %v72_v27  ;;  %v100_v33 = vmul.f32 %v264_v29, %v94_v26  ;;  %v233_v26 = vlaneseq }
  0xb5   :  { %v79_v31 = vadd.f32 %v78_v28, %v68_v24  ;;  %v234_v27 = vand.u32 127, %v233_v26 }
  0xb7   :  { %v90_v34 = vadd.f32 %v89_v30, %v79_v31  ;;  %v105_v35 = vpop.permute.xlu1 %104  ;;  %v116_v37 = vpop.permute.xlu0 %115  ;;  %vm235_vm0 = vcmp.eq.s32.totalorder %v234_v27, 2  ;;  %vm237_vm1 = vcmp.eq.s32.totalorder %v234_v27, 1  ;;  %vm239_vm2 = vcmp.eq.s32.totalorder %v234_v27, 0 }
  0xb8   :  { %v111_v38 = vmul.f32 %v265_v32, %v105_v35  ;;  %v122_v40 = vmul.f32 %v266_v36, %v116_v37 }
  0xb9   :  { %v101_v39 = vadd.f32 %v100_v33, %v90_v34 }
  0xbb   :  { %v112_v41 = vadd.f32 %v111_v38, %v101_v39 }
  0xbc   :  { %v127_v43 = vpop.permute.xlu1 %126  ;;  %v149_v49 = vpop.permute.xlu0 %148 }
  0xbd   :  { %v123_v44 = vadd.f32 %v122_v40, %v112_v41  ;;  %v133_v45 = vmul.f32 %v267_v42, %v127_v43  ;;  %v155_v53 = vmul.f32 %v269_v48, %v149_v49 }
  0xbf   :  { %v134_v50 = vadd.f32 %v133_v45, %v123_v44 }
  0xc1   :  { %v138_v47 = vpop.permute.xlu1 %137  ;;  %v182_v60 = vpop.permute.xlu0 %181 }
  0xc2   :  { %v144_v51 = vmul.f32 %v268_v46, %v138_v47  ;;  %v188_v0 = vmul.f32 %v272_v59, %v182_v60 }
  0xc4   :  { %v145_v52 = vadd.f32 %v144_v51, %v134_v50 }
  0xc6   :  { %v160_v55 = vpop.permute.xlu1 %159  ;;  %v156_v56 = vadd.f32 %v155_v53, %v145_v52 }
  0xc7   :  { %v166_v57 = vmul.f32 %v270_v54, %v160_v55 }
  0xc9   :  { %v167_v62 = vadd.f32 %v166_v57, %v156_v56 }
  0xcb   :  { %v171_v61 = vpop.permute.xlu1 %170 }
  0xcc   :  { %v177_v63 = vmul.f32 %v271_v58, %v171_v61 }
  0xce   :  { %v178_v1 = vadd.f32 %v177_v63, %v167_v62 }
  0xd0   :  { %v189_v2 = vadd.f32 %v188_v0, %v178_v1 }
  0xd2   :  { %v190_v5 = vmax.f32 %v189_v2, 0.0 }
  0xd4   :  { %v204_v6 = vmul.f32 %v274_v3, %v190_v5  ;;  %v196_v7 = vmul.f32 %v273_v4, %v190_v5  ;;  %v212_v9 = vmul.f32 %v275_v8, %v190_v5 }
  0xd6   :  { %205 = vadd.xlane.f32.xlu0 %v204_v6  ;;  %197 = vadd.xlane.f32.xlu1 %v196_v7 }
  0xda   :  { %213 = vadd.xlane.f32.xlu1 %v212_v9 }
 0x163   :  { %v206_v10 = vpop.xlane.xlu0 %205  ;;  %v198_v11 = vpop.xlane.xlu1 %197 }
 0x164   :  { %v215_v12 = vmax.f32 %v198_v11, %v206_v10 }
 0x167   :  { %v214_v13 = vpop.xlane.xlu1 %213 }
 0x168   :  { %v216_v14 = vmax.f32 %v215_v12, %v214_v13 }
 0x16a   :  { %v217_v15 = vsub.f32 %v198_v11, %v216_v14  ;;  %v220_v16 = vsub.f32 %v206_v10, %v216_v14  ;;  %v223_v17 = vsub.f32 %v214_v13, %v216_v14 }
 0x16c   :  { %v218_v18 = vmul.f32 1.442695, %v217_v15  ;;  %v221_v19 = vmul.f32 1.442695, %v220_v16  ;;  %v224_v20 = vmul.f32 1.442695, %v223_v17 }
 0x16e   :  { %305 = vpow2.f32 %v218_v18 }
 0x16f   :  { %307 = vpow2.f32 %v221_v19 }
 0x170   :  { %309 = vpow2.f32 %v224_v20 }
 0x178   :  { %v306_v21 = vpop.eup %305 }
 0x179   :  { %v308_v22 = vpop.eup %307 }
 0x17a   :  { %v226_v23 = vadd.f32 %v308_v22, %v306_v21  ;;  %v310_v24 = vpop.eup %309 }
 0x17c   :  { %v227_v25 = vadd.f32 %v310_v24, %v226_v23 }
 0x17e   :  { %311 = vrcp.f32 %v227_v25 }
 0x188   :  { %v312_v28 = vpop.eup %311 }
 0x189   :  { %v231_v29 = vmul.f32 %v312_v28, %v308_v22  ;;  %v232_v30 = vmul.f32 %v312_v28, %v310_v24  ;;  %v230_v31 = vmul.f32 %v312_v28, %v306_v21 }
 0x18b   :  { %v236_v32 = vsel %vm235_vm0, %v232_v30, 0.0 }
 0x18c   :  { %v238_v33 = vsel %vm237_vm1, %v231_v29, %v236_v32 }
 0x18d   :  { %v240_v34 = vsel %vm239_vm2, %v230_v31, %v238_v33 }
 0x18e   :  { %241 = vst [vmem:[#allocation7] sm:$0xff] %v240_v34 }
 0x18f   :  { %368 = shalt.err (!%p365_p6)
}
 0x190   :  { %s369_s10 = scalar_lea.hbm %s462_s2, 128 }
 0x191   :  { %p370_p7 = scmp.ne.s32.totalorder %s462_s2, %s369_s10  ;;  %p373_p8 = scmp.lt.u32.totalorder %s369_s10, %s462_s2 }
 0x193   :  { %p375_p9 = pnand %p373_p8, %p370_p7 }
 0x195   :  { %378 = shalt.err (!%p375_p9)
}
 0x196   :  { %251 = dma.vmem_to_hbm [thread:$0]  %s249_s6, 128, %s462_s2, [#allocation4]  }
 0x197   :  { %383 = dma.done.wait [#allocation4], 128  }
 0x198   :  { %384 = vsyncadd [#allocation4], 4294967168 }
 0x199   :  { %255 = vsyncpa [#allocation3], 1 }
 0x19a   :  { %256 = vsyncpa [#allocation6], 1 }
 0x19b   :  { %257 = vsyncpa [#allocation4], 1 }

</bundles_post_ra>
